<compile_context>
chip_gen: v6e
topology: v6e:2x2x1
jax: 0.10.0
libtpu: 0.0.40
codegen_flags: <defaults>
</compile_context>

<pallas_src>
import jax
import jax.numpy as jnp
from jax import lax
from jax.experimental import pallas as pl
from jax.experimental.pallas import tpu as pltpu


def _round_up(x, m):
    return ((x + m - 1) // m) * m


def _conv_bn_kernel(w_ref, b_ref, t_ref, o_ref):
    # w_ref: (TCO, K)    bf16  BN-scale-folded conv weights (resident across n/p tiles)
    # b_ref: (TCO, 1)    f32   folded BN bias (broadcast over lanes)
    # t_ref: (1, K, TP)  bf16  space-to-depth taps for one batch / spatial tile
    # o_ref: (1, TCO, TP) f32
    acc = jnp.dot(w_ref[...], t_ref[0], preferred_element_type=jnp.float32)
    o_ref[0] = (acc + b_ref[...]).astype(o_ref.dtype)


def downsample_d(x, conv_w, gamma, beta, running_mean, running_var, eps=1e-5):
    """x: (N, Cin, H, W) float32; conv_w: (Cout, Cin, 2, 2). Returns NCHW float32."""
    N, Cin, H, W = x.shape
    Cout = conv_w.shape[0]
    Ho, Wo = H // 2, W // 2          # k=2, s=2, VALID
    P = Ho * Wo
    K = 4 * Cin

    # --- glue: one fused bf16 space-to-depth (input only; output stays NCHW) ---
    # taps[n, (kh*2+kw)*Cin + ci, ho*Wo + wo] = x[n, ci, 2*ho+kh, 2*wo+kw]
    xb = x[:, :, :2 * Ho, :2 * Wo].astype(jnp.bfloat16)
    xr = xb.reshape(N, Cin, Ho, 2, Wo, 2)
    taps = jnp.transpose(xr, (0, 3, 5, 1, 2, 4)).reshape(N, K, P)

    # --- fold BatchNorm (eval mode) into weights / bias ---
    # TODO(synk): only inference BN (running stats) is implemented, matching .eval().
    scale = gamma / jnp.sqrt(running_var + eps)                    # (Cout,)
    bias = (beta - running_mean * scale).astype(jnp.float32).reshape(Cout, 1)
    w_mat = jnp.transpose(conv_w, (0, 2, 3, 1)).reshape(Cout, K)   # matches taps K order
    w_scaled = (w_mat * scale[:, None]).astype(jnp.bfloat16)       # (Cout, K) bf16

    # --- tile sizing (fits comfortably in v7x's 64 MiB VMEM; generous on v5e/v6e) ---
    if Cout <= 256:
        TCO = _round_up(Cout, 8)
        Cout_pad = TCO
    else:
        TCO = 256
        Cout_pad = _round_up(Cout, TCO)

    TP_target = 1024 if K <= 2048 else 512        # keep K*TP bf16 tiles ~<= 4 MiB
    TP = min(TP_target, _round_up(P, 128))        # lane-dense spatial tile
    P_pad = _round_up(P, TP)

    if Cout_pad != Cout:
        w_scaled = jnp.pad(w_scaled, ((0, Cout_pad - Cout), (0, 0)))
        bias = jnp.pad(bias, ((0, Cout_pad - Cout), (0, 0)))
    if P_pad != P:
        taps = jnp.pad(taps, ((0, 0), (0, 0), (0, P_pad - P)))

    grid = (Cout_pad // TCO, N, P_pad // TP)      # spatial innermost -> weights stay resident

    cost = pl.CostEstimate(
        flops=2 * N * P * K * Cout,
        transcendentals=0,
        bytes_accessed=(taps.size * 2 + w_scaled.size * 2 + bias.size * 4
                        + N * Cout_pad * P_pad * 4),
    )

    out_flat = pl.pallas_call(
        _conv_bn_kernel,
        out_shape=jax.ShapeDtypeStruct((N, Cout_pad, P_pad), jnp.float32),
        grid_spec=pltpu.PrefetchScalarGridSpec(
            num_scalar_prefetch=0,
            grid=grid,
            in_specs=[
                pl.BlockSpec((TCO, K), lambda i, n, j: (i, 0)),      # weights: only Cout-dep
                pl.BlockSpec((TCO, 1), lambda i, n, j: (i, 0)),      # bias
                pl.BlockSpec((1, K, TP), lambda i, n, j: (n, 0, j)),  # taps
            ],
            out_specs=pl.BlockSpec((1, TCO, TP), lambda i, n, j: (n, i, j)),
        ),
        compiler_params=pltpu.CompilerParams(
            dimension_semantics=("parallel", "parallel", "parallel"),
            vmem_limit_bytes=48 * 1024 * 1024,
        ),
        cost_estimate=cost,
    )(w_scaled, bias, taps)

    # (N, Cout_pad, P_pad) -> (N, Cout, Ho, Wo): slice padding, free reshape, already NCHW.
    return out_flat[:, :Cout, :P].reshape(N, Cout, Ho, Wo)


def _reference(x, conv_w, gamma, beta, running_mean, running_var, eps=1e-5):
    y = lax.conv_general_dilated(
        x, conv_w, window_strides=(2, 2), padding="VALID",
        dimension_numbers=("NCHW", "OIHW", "NCHW"))
    scale = (gamma / jnp.sqrt(running_var + eps)).reshape(1, -1, 1, 1)
    shift = (beta - running_mean * gamma / jnp.sqrt(running_var + eps)).reshape(1, -1, 1, 1)
    return y * scale + shift


if __name__ == "__main__":
    key = jax.random.PRNGKey(0)
    kx, kw, kg, kb, km, kv = jax.random.split(key, 6)

    N, Cin, H, W = 2, 4, 16, 16
    Cout = 8  # stride is fixed to 2 by the module

    x = jax.random.normal(kx, (N, Cin, H, W), dtype=jnp.float32)
    conv_w = jax.random.normal(kw, (Cout, Cin, 2, 2), dtype=jnp.float32) * 0.1
    gamma = 1.0 + 0.1 * jax.random.normal(kg, (Cout,), dtype=jnp.float32)
    beta = 0.1 * jax.random.normal(kb, (Cout,), dtype=jnp.float32)
    running_mean = 0.05 * jax.random.normal(km, (Cout,), dtype=jnp.float32)
    running_var = 1.0 + 0.1 * jax.random.uniform(kv, (Cout,), dtype=jnp.float32)

    out = downsample_d(x, conv_w, gamma, beta, running_mean, running_var)
    out = jax.block_until_ready(out)

    ref = _reference(x, conv_w, gamma, beta, running_mean, running_var)
    assert out.shape == (N, Cout, H // 2, W // 2), out.shape
    # bf16 matmul inputs (f32 accumulate) -> loosened tolerance vs. f32 reference.
    assert jnp.allclose(out, ref, atol=3e-2, rtol=3e-2), float(jnp.max(jnp.abs(out - ref)))

    print("KERNEL_OK")
</pallas_src>

<mosaic_0001>
module attributes {stable_mosaic.version = 11 : i64} {
  func.func @_conv_bn_kernel(%arg0: i32, %arg1: i32, %arg2: i32, %arg3: memref<8x16xbf16, #tpu.memory_space<vmem>>, %arg4: memref<8x1xf32, #tpu.memory_space<vmem>>, %arg5: memref<1x16x128xbf16, #tpu.memory_space<vmem>>, %arg6: memref<1x8x128xf32, #tpu.memory_space<vmem>>) attributes {dimension_semantics = [#tpu.dimension_semantics<parallel>, #tpu.dimension_semantics<parallel>, #tpu.dimension_semantics<parallel>], iteration_bounds = array<i64: 1, 2, 1>, scalar_prefetch = 0 : i64, scratch_operands = 0 : i64, tpu.core_type = #tpu.core_type<tc>, window_params = [{transform_indices = @transform_0, window_bounds = array<i64: 8, 16>}, {transform_indices = @transform_1, window_bounds = array<i64: 8, 1>}, {transform_indices = @transform_2, window_bounds = array<i64: 1, 16, 128>}, {transform_indices = @transform_3, window_bounds = array<i64: 1, 8, 128>}]} {
    %c0 = arith.constant 0 : index
    %c0_0 = arith.constant 0 : index
    %0 = vector.load %arg3[%c0, %c0_0] : memref<8x16xbf16, #tpu.memory_space<vmem>>, vector<8x16xbf16>
    %c0_1 = arith.constant 0 : index
    %c0_2 = arith.constant 0 : index
    %c0_3 = arith.constant 0 : index
    %1 = vector.load %arg5[%c0_1, %c0_2, %c0_3] : memref<1x16x128xbf16, #tpu.memory_space<vmem>>, vector<1x16x128xbf16>
    %2 = vector.shape_cast %1 : vector<1x16x128xbf16> to vector<16x128xbf16>
    %cst = arith.constant dense<0.000000e+00> : vector<8x128xf32>
    %3 = tpu.matmul %0, %2, %cst {dimension_numbers = #tpu.dot_dimension_numbers<[1], [0], [0], [1], [0, 0, 1, 1], [], []>} : vector<8x16xbf16>, vector<16x128xbf16>, vector<8x128xf32> -> vector<8x128xf32>
    %c0_4 = arith.constant 0 : index
    %c0_5 = arith.constant 0 : index
    %4 = vector.load %arg4[%c0_4, %c0_5] : memref<8x1xf32, #tpu.memory_space<vmem>>, vector<8x1xf32>
    %5 = vector.broadcast %4 : vector<8x1xf32> to vector<8x128xf32>
    %6 = arith.addf %3, %5 : vector<8x128xf32>
    %c0_6 = arith.constant 0 : index
    %c0_7 = arith.constant 0 : index
    %c0_8 = arith.constant 0 : index
    %7 = vector.load %arg6[%c0_6, %c0_7, %c0_8] : memref<1x8x128xf32, #tpu.memory_space<vmem>>, vector<1x8x128xf32>
    %8 = vector.shape_cast %7 : vector<1x8x128xf32> to vector<8x128xf32>
    %9 = vector.shape_cast %6 : vector<8x128xf32> to vector<1x8x128xf32>
    tpu.vector_store %arg6[%c0_6, %c0_7, %c0_8], %9 {strides = array<i32>} : memref<1x8x128xf32, #tpu.memory_space<vmem>>, vector<1x8x128xf32>,
    return
  }
  func.func @transform_0(%arg0: i32, %arg1: i32, %arg2: i32) -> (i32, i32) {
    %c0_i32 = arith.constant 0 : i32
    %c0_i32_0 = arith.constant 0 : i32
    return %arg0, %c0_i32 : i32, i32
  }
  func.func @transform_1(%arg0: i32, %arg1: i32, %arg2: i32) -> (i32, i32) {
    %c0_i32 = arith.constant 0 : i32
    %c0_i32_0 = arith.constant 0 : i32
    return %arg0, %c0_i32 : i32, i32
  }
  func.func @transform_2(%arg0: i32, %arg1: i32, %arg2: i32) -> (i32, i32, i32) {
    %c0_i32 = arith.constant 0 : i32
    %c0_i32_0 = arith.constant 0 : i32
    return %arg1, %c0_i32, %arg2 : i32, i32, i32
  }
  func.func @transform_3(%arg0: i32, %arg1: i32, %arg2: i32) -> (i32, i32, i32) {
    %c0_i32 = arith.constant 0 : i32
    return %arg1, %arg0, %arg2 : i32, i32, i32
  }
}

</mosaic_0001>

<bundles_post_ra>
// kernel: tpu_custom_call.1
= control target key start
LH: loop header
LB: loop body
LE: loop exit
PB: predicated region body
PF: predicated region fallthrough
CT: control target
= control target key end

     0   :  { %8 = vsyncpa [#allocation3], 0  ;;  %s824_s0 = inlined_call_operand.vmem [shape: bf16[8,16], index: 0, kind: input, shape index: {}]   ;;  %s825_s1 = inlined_call_operand.vmem [shape: f32[8,1], index: 1, kind: input, shape index: {}]   ;;  %s826_s2 = inlined_call_operand.hbm [shape: bf16[2,16,128], index: 2, kind: input, shape index: {}]   ;;  %s827_s3 = inlined_call_operand.hbm [shape: f32[2,8,128], index: 3, kind: output, shape index: {}]  }
   0x1   :  { %10 = vsyncpa [#allocation3 + $0x1], 0 }
   0x2   :  { %11 = vsyncpa [#allocation4], 0 }
   0x3   :  { %13 = vsyncpa [#allocation4 + $0x1], 0  ;;  %s674_s12 = smov 0   ;;  %s676_s13 = smov 0  }
   0x4   :  { %s678_s14 = smov 0   ;;  %s680_s15 = smov 0  }
   0x5   :  { %s682_s16 = smov 0   ;;  %s684_s17 = smov 0  }
   0x6 LB: > { %s441_s18 = sadd.s32 4294967295, %s645_s17   ;;  %s442_s19 = sadd.s32 4294967294, %s645_s17   ;;  %s645_s17 = sphi %s684_s17, %s19_s17   ;;  %s641_s16 = sphi %s682_s16, %s838_s16   ;;  %s637_s15 = sphi %s680_s15, %s837_s15   ;;  %s633_s14 = sphi %s678_s14, %s836_s14   ;;  %s629_s13 = sphi %s676_s13, %s835_s13   ;;  %s625_s12 = sphi %s674_s12, %s834_s12  }
   0x7   : > { %s34_s20 = sadd.s32 1, %s641_s16  ;;  %s99_s21 = sadd.s32 1, %s633_s14 }
   0x8   : > { %p36_p0 = scmp.ge.s32.totalorder %s34_s20, 2  ;;  %p106_p1 = scmp.ne.s32.totalorder %s633_s14, %s629_s13 }
   0x9   : > { %p107_p2 = scmp.eq.s32.totalorder %s645_s17, 0  ;;  %p112_p3 = scmp.ne.s32.totalorder %s629_s13, %s625_s12 }
   0xa   : > { %s840_s20 = smov (%p36_p0, %s34_s20), 0  ;;  %p113_p5 = scmp.eq.s32.totalorder %s441_s18, 0 }
   0xb   : > { %p715_p4 = por %p107_p2, %p106_p1  ;;  %s94_s23 = ssub.s32 %s641_s16, %s840_s20 }
   0xc   : > { %p140_p6 = scmp.eq.s32.totalorder %s441_s18, 1  ;;  %p97_p7 = scmp.eq.s32.totalorder %s94_s23, 0 }
   0xd   : > { %p721_p8 = por %p113_p5, %p112_p3  ;;  %p146_p10 = scmp.eq.s32.totalorder %s442_s19, 1 }
   0xe   : > { %p725_p9 = por %p140_p6, %p106_p1  ;;  %p480_p13 = scmp.lt.s32.totalorder %s645_s17, 2 }
   0xf   : > { %s730_s26 = scalar_select %p97_p7, %s633_s14, %s99_s21  }
  0x10   : > { %p732_p11 = por %p146_p10, %p112_p3  ;;  %s180_s28 = sand.u32 1, %s633_s14  }
  0x11   : > { %s447_s29 = sshll.u32 %s180_s28, 3  ;;  %s459_s30 = sshll.u32 %s641_s16, 7 }
  0x12   : > { %s191_s6 = scalar_lea.hbm %s826_s2, %s459_s30  ;;  %s184_s7 = scalar_lea.vmem [#allocation2], %s447_s29 }
  0x13   : > { %s192_s8 = sshll.u32 %s184_s7, 4  ;;  %p745_p0 = pnand %p480_p13, %p715_p4  ;;  %s193_s8 = int_to_ptr.vmem [resolvable:$true] %s192_s8 }
  0x14   : > { %p450_p1 = scmp.ge.s32.totalorder %s645_s17, 1  ;;  %s181_s10 = scalar_lea.sflag [#allocation3], %s180_s28 }
  0x15   : > { %p539_p2 = pneg %p745_p0  ;;  %s550_s11 = scalar_lea.vmem %s193_s8, 128 }
  0x16   : > { %p551_p3 = scmp.ne.s32.totalorder %s193_s8, %s550_s11  ;;  %s647_s18 = smov [#allocation2]  }
  0x17   : > { %s555_s19 = sshll.u32 %s647_s18, 4  ;;  %s556_s19 = int_to_ptr.vmem [resolvable:$false] %s555_s19 }
  0x18   : > { %p553_p5 = pnand %p551_p3, %p539_p2  ;;  %s557_s21 = scalar_lea.vmem %s556_s19, 256 }
  0x19   : > { %p558_p7 = scmp.lt.s32.totalorder %s193_s8, %s556_s19  ;;  %p559_p10 = scmp.lt.s32.totalorder %s557_s21, %s550_s11 }
  0x1a   : > { %p554_p6 = pneg %p553_p5 }
  0x1b   : > { %p560_p12 = por %p559_p10, %p558_p7 }
  0x1d   : > { %p561_p4 = pnand %p560_p12, %p554_p6 }
  0x1f   : > { %564 = shalt.err (!%p561_p4)
}
  0x20   : > { %s648_s22 = smov 64   ;;  %s649_s23 = smov 4  }
  0x21   : > { %475 = dma.hbm_to_vmem [thread:$0]  (!%p745_p0), %s191_s6, 128, %s193_s8, %s181_s10, %s648_s22, %s648_s22, %s649_s23  }
  0x22   : > { %p200_p13 = scmp.lt.s32.totalorder %s645_s17, 3 }
  0x24   : > { %p201_p2 = pnand %p450_p1, %p200_p13 }
  0x25   : > { %s758_s28 = sand.u32 (!%p201_p2), 1, %s629_s13  }
  0x26   : > { %204 = sbr.rel (%p201_p2) target bundleno = 258 (0x102), region = 32  ;;  %s451_s29 = sshll.u32 (!%p201_p2), %s758_s28, 3 }
  0x27   : > { %s207_s30 = scalar_lea.sflag (!%p201_p2), [#allocation3], %s758_s28  ;;  %s210_s4 = scalar_lea.vmem (!%p201_p2), [#allocation2], %s451_s29 }
  0x2b   : > { %616 = dma.done.wait (%p721_p8), %s207_s30, 128  }
  0x2c   : > { %618 = vsyncadd (%p721_p8), %s207_s30, 4294967168  ;;  %v650_v0 = vmov 0.0   ;;  %vm651_vm0 = vmmov 0   ;;  %v652_v1 = vmov 0   ;;  %v536_v2 = vld [vmem:[%s210_s4] sm:$0xff]   ;;  %vm265_vm1 = vcmask 130048  }
  0x2d   : > { %462 = vmatprep.subr.bf16.mxu0 %v650_v0  ;;  %464 = vmatprep.mubr.msk.bf16.mxu0 %vm651_vm0, %v650_v0  ;;  %v253_v3 = vld [vmem:[%s825_s1] sm:$0xff]  ;;  %s456_s24 = sshll.u32 %s637_s15, 7  ;;  %s240_s9 = scalar_lea.vmem [#allocation5], %s451_s29 }
  0x2e   : > { %535 = vset.pattern.permute.xlu0 %v652_v1  ;;  %463 = vmatpush3.bf16.msra.mxu0 %v536_v2  ;;  %v250_v4 = vld [vmem:[%s824_s0] sm:$0xf]  ;;  %s326_s10 = sshll.u32 %s240_s9, 4  ;;  %s776_s19 = scalar_lea.hbm %s827_s3, %s456_s24  ;;  %s778_s10 = int_to_ptr.vmem [resolvable:$true] %s326_s10 }
  0x2f   : > { %256 = vperm.xlu0 %535, %v253_v3   ;;  %s311_s21 = scalar_lea.sflag [#allocation4], %s758_s28  ;;  %s565_s22 = scalar_lea.vmem %s778_s10, 128 }
  0x30   : > { %p566_p8 = scmp.ne.s32.totalorder %s778_s10, %s565_s22  ;;  %s653_s15 = smov [#allocation5]  }
  0x31   : > { %465 = vmatmul.mubr.msk.bf16.vlgmr.msra.gmra.mxu0 %vm265_vm1, %v250_v4  ;;  %s569_s23 = sshll.u32 %s653_s15, 4  ;;  %s570_s23 = int_to_ptr.vmem [resolvable:$false] %s569_s23 }
  0x32   : > { %p567_p12 = pnand %p566_p8, %p725_p9  ;;  %s571_s29 = scalar_lea.vmem %s570_s23, 256 }
  0x33   : > { %p572_p1 = scmp.lt.s32.totalorder %s778_s10, %s570_s23  ;;  %p573_p3 = scmp.lt.s32.totalorder %s571_s29, %s565_s22 }
  0x34   : > { %p568_p0 = pneg %p567_p12 }
  0x35   : > { %p574_p5 = por %p573_p3, %p572_p1 }
  0x37   : > { %p575_p6 = pnand %p574_p5, %p568_p0 }
  0xaa   : > { %v257_v5 = vpop.permute.xlu0 %256 }
  0xf1   : > { %v303_v6 = vpop.f32.mrf.mxu0 }
  0xf2   : > { %v304_v7 = vadd.f32 %v303_v6, %v257_v5 }
  0xf3   : > { %v466_v8 = vpop.f32.mrf.mxu0 }
  0xf4   : > { %309 = vst [vmem:[%s240_s9] sm:$0xff] %v304_v7 }
  0xf5   : > { %v306_v9 = vpop.f32.mrf.mxu0 }
  0xf6   : > { %578 = shalt.err (!%p575_p6)
}
  0xf7   : > { %s579_s30 = scalar_lea.hbm %s776_s19, 128  ;;  %s583_s5 = scalar_lea.hbm %s827_s3, 256 }
  0xf8   : > { %p580_p7 = scmp.ne.s32.totalorder %s776_s19, %s579_s30  ;;  %p584_p13 = scmp.lt.s32.totalorder %s776_s19, %s827_s3 }
  0xf9   : > { %p585_p2 = scmp.lt.s32.totalorder %s583_s5, %s579_s30 }
  0xfa   : > { %p581_p10 = pnand %p580_p7, %p725_p9 }
  0xfb   : > { %p586_p8 = por %p585_p2, %p584_p13 }
  0xfc   : > { %p582_p4 = pneg %p581_p10 }
  0xfe   : > { %p587_p12 = pnand %p586_p8, %p582_p4 }
 0x100   : > { %590 = shalt.err (!%p587_p12)
}
 0x101   : > { %470 = dma.vmem_to_hbm [thread:$0]  (%p725_p9), %s778_s10, 128, %s776_s19, %s311_s21   ;;  %v467_v10 = vpop.f32.mrf.mxu0 }
 0x102 PF: > { %s338_s8 = sand.u32 1, %s625_s12   ;;  %p833_p0 = scmp.ge.s32.totalorder %s645_s17, 2 }
 0x103   : > { %s339_s24 = scalar_lea.sflag [#allocation4], %s338_s8 }
 0x104   : > { %p477_p1 = pnand %p833_p0, %p732_p11 }
 0x106   : > { %p478_p3 = pneg %p477_p1 }
 0x108   : > { %620 = dma.done.wait (%p478_p3), %s339_s24, 128  }
 0x109   : > { %622 = vsyncadd (%p478_p3), %s339_s24, 4294967168  ;;  %s19_s17 = sadd.s32 1, %s645_s17   ;;  %s834_s12 = smov %s629_s13 }
 0x10a   : > { %p16_p5 = scmp.ge.s32.totalorder %s19_s17, 4   ;;  %s835_s13 = smov %s633_s14 }
 0x10b   : > { %s836_s14 = smov %s730_s26  ;;  %s837_s15 = smov %s641_s16 }
 0x10c   : > { %s838_s16 = smov %s840_s20  ;;  %18 = sbr.rel (!%p16_p5) target bundleno = 6 (0x6), region = 83 }
 0x111   :  { %344 = vsyncpa [#allocation3], 1 }
 0x112   :  { %346 = vsyncpa [#allocation3 + $0x1], 1 }
 0x113   :  { %347 = vsyncpa [#allocation4], 1 }
 0x114   :  { %349 = vsyncpa [#allocation4 + $0x1], 1 }

</bundles_post_ra>
